<compile_context>
chip_gen: v7x
topology: tpu7x:2x2x1
jax: 0.10.0
libtpu: 0.0.40
codegen_flags: <defaults>
</compile_context>

<pallas_src>
import jax
import jax.numpy as jnp
from jax.experimental import pallas as pl
from jax.experimental.pallas import tpu as pltpu


# ---------------------------------------------------------------------------
# Kernel: one batch tile per grid step.
#   y = (x @ W1) @ W2 + b2_eff        with b2_eff = b1 @ W2 + b2 (pre-folded)
# ---------------------------------------------------------------------------
def autoencoder_kernel(x_ref, w1_ref, w2_ref, b2_ref, o_ref):
    # Encoder matmul, f32 accumulation on the MXU.
    h = jnp.dot(x_ref[...], w1_ref[...], preferred_element_type=jnp.float32)
    # Decoder matmul (h cast to the weight compute dtype; no-op for f32).
    y = jnp.dot(h.astype(w2_ref.dtype), w2_ref[...],
                preferred_element_type=jnp.float32)
    # Single folded bias add, once per output tile.
    o_ref[...] = (y + b2_ref[...]).astype(o_ref.dtype)


def _round_up(n, m):
    return ((n + m - 1) // m) * m


# Scoped-VMEM limit we request (safe on v5e: raises 16MiB default; equals the
# default on v6e/v7x) and the working budget used when deriving the batch tile.
_VMEM_LIMIT_BYTES = 32 * 1024 * 1024
_VMEM_TILE_BUDGET = 24 * 1024 * 1024


# ---------------------------------------------------------------------------
# One-time parameter preparation (hoisted out of the per-call forward).
# ---------------------------------------------------------------------------
def prepare_params(w1, b1, w2, b2, *, compute_dtype=None):
    """Pad feature dims to 128 lanes, fold b1 into b2, cast to compute dtype.

    w1: (input_size, encoding_dim)   (already transposed vs torch (out, in))
    b1: (encoding_dim,) or (1, encoding_dim)
    w2: (encoding_dim, output_size)
    b2: (output_size,) or (1, output_size)
    compute_dtype: optional narrower dtype (e.g. jnp.bfloat16) for x/W1/W2;
                   halves HBM traffic on all TPU generations. Accumulation and
                   the folded bias stay f32.
    """
    in_size, enc_dim = w1.shape
    out_size = w2.shape[1]
    e_p = _round_up(enc_dim, 128)
    o_p = _round_up(out_size, 128)

    wdt = compute_dtype if compute_dtype is not None else w1.dtype

    # Fold the encoder bias into the decoder bias (exact in f32):
    #   (x@W1 + b1)@W2 + b2 == (x@W1)@W2 + (b1@W2 + b2)
    b2_eff = (b1.reshape(1, -1).astype(jnp.float32)
              @ w2.astype(jnp.float32)
              + b2.reshape(1, -1).astype(jnp.float32))

    # Zero-pad only the lane (last) feature dims to multiples of 128 so the
    # MXU columns are full and output stores are unmasked `vst`. The K dims
    # (rows of W1) stay at full size so x never needs feature padding.
    w1_p = jnp.zeros((in_size, e_p), wdt).at[:, :enc_dim].set(w1.astype(wdt))
    w2_p = jnp.zeros((e_p, o_p), wdt).at[:enc_dim, :out_size].set(w2.astype(wdt))
    b2_p = jnp.zeros((1, o_p), jnp.float32).at[:, :out_size].set(b2_eff)

    return dict(w1=w1_p, w2=w2_p, b2=b2_p,
                in_size=in_size, enc_dim=enc_dim, out_size=out_size,
                e_p=e_p, o_p=o_p, compute_dtype=wdt)


def _derive_batch_tiling(B, in_size, e_p, o_p, x_itemsize, out_itemsize,
                         weight_bytes):
    """Pick (tm, n_tiles, padded_batch): VMEM-budget-derived tile, multiple of
    8, >= 2 tiles for large batches (v7x megacore), minimal batch padding."""
    b8 = _round_up(max(B, 1), 8)
    # Live VMEM per batch row: double-buffered x tile + double-buffered output
    # tile + the f32 intermediate h.
    per_row = 2 * in_size * x_itemsize + 2 * o_p * out_itemsize + e_p * 4
    avail = max(_VMEM_TILE_BUDGET - weight_bytes, 8 * per_row)
    tm = int(avail // per_row)
    tm = max(8, min(tm, 2048, b8))
    tm -= tm % 8
    # v7x megacore: give the "parallel" batch axis at least 2 grid steps.
    if b8 >= 512:
        half = max(8, (b8 // 2) - ((b8 // 2) % 8))
        tm = min(tm, half)
    n_tiles = -(-b8 // tm)
    # Rebalance the tile size down so dead padded rows stay minimal.
    tm = _round_up(-(-b8 // n_tiles), 8)
    return tm, n_tiles, n_tiles * tm


# ---------------------------------------------------------------------------
# Forward pass wrapper.
# ---------------------------------------------------------------------------
def autoencoder_forward(x, params):
    """x: (B, input_size). Returns (B, output_size) in x.dtype."""
    B, in_size = x.shape
    assert in_size == params["in_size"], "input feature size mismatch"

    e_p, o_p = params["e_p"], params["o_p"]
    out_size = params["out_size"]
    cdt = params["compute_dtype"]
    out_dtype = x.dtype

    w_itemsize = jnp.dtype(cdt).itemsize
    # Conservative budget: count weights as double-buffered in case the
    # compiler ignores the single-buffer request below.
    weight_bytes = 2 * ((in_size * e_p + e_p * o_p) * w_itemsize + o_p * 4)

    tm, n_tiles, b_p = _derive_batch_tiling(
        B, in_size, e_p, o_p,
        x_itemsize=jnp.dtype(cdt).itemsize,
        out_itemsize=jnp.dtype(out_dtype).itemsize,
        weight_bytes=weight_bytes)

    # Conditional input copy: only pad rows / cast dtype when actually needed.
    if b_p != B or x.dtype != jnp.dtype(cdt):
        x_in = jnp.zeros((b_p, in_size), cdt).at[:B, :].set(x.astype(cdt))
    else:
        x_in = x

    def call(single_buffer_weights):
        res_kw = ({"pipeline_mode": pl.Buffered(1)}
                  if single_buffer_weights else {})
        resident = lambda shape: pl.BlockSpec(shape, lambda i: (0, 0), **res_kw)
        return pl.pallas_call(
            autoencoder_kernel,
            out_shape=jax.ShapeDtypeStruct((b_p, o_p), out_dtype),
            grid=(n_tiles,),
            in_specs=[
                pl.BlockSpec((tm, in_size), lambda i: (i, 0)),  # x: batch tiles
                resident((in_size, e_p)),                       # W1 (resident)
                resident((e_p, o_p)),                           # W2 (resident)
                resident((1, o_p)),                             # folded bias
            ],
            out_specs=pl.BlockSpec((tm, o_p), lambda i: (i, 0)),
            compiler_params=pltpu.CompilerParams(
                dimension_semantics=("parallel",),  # shard batch tiles on v7x
                vmem_limit_bytes=_VMEM_LIMIT_BYTES,
            ),
        )(x_in, params["w1"], params["w2"], params["b2"])

    try:
        out_p = call(True)      # weights/bias single-buffered (blocks constant)
    except Exception:           # pipeline_mode not supported -> default bufs
        out_p = call(False)

    # Conditional output slice: only copy when padding was introduced.
    if b_p != B or o_p != out_size:
        return out_p[:B, :out_size]
    return out_p


def init_linear(key, in_features, out_features, dtype=jnp.float32):
    """Mirrors nn.Linear default init U(-1/sqrt(fan_in), 1/sqrt(fan_in)).
    Weight returned already transposed to (in, out); bias (1, out)."""
    kw, kb = jax.random.split(key)
    bound = 1.0 / (in_features ** 0.5)
    w = jax.random.uniform(kw, (in_features, out_features), dtype,
                           minval=-bound, maxval=bound)
    b = jax.random.uniform(kb, (1, out_features), dtype,
                           minval=-bound, maxval=bound)
    return w, b


if __name__ == "__main__":
    batch, input_size, encoding_dim, output_size = 8, 32, 16, 32

    key = jax.random.PRNGKey(0)
    k_x, k_enc, k_dec = jax.random.split(key, 3)

    x = jax.random.normal(k_x, (batch, input_size), jnp.float32)
    w1, b1 = init_linear(k_enc, input_size, encoding_dim)
    w2, b2 = init_linear(k_dec, encoding_dim, output_size)

    # One-time parameter prep (hoisted out of the forward call).
    params = prepare_params(w1, b1, w2, b2)

    # f32 path (default): must match the pure-JAX reference tightly.
    out = autoencoder_forward(x, params)
    out = jax.block_until_ready(out)
    ref = (x @ w1 + b1) @ w2 + b2
    assert out.shape == (batch, output_size)
    assert jnp.allclose(out, ref, atol=1e-5, rtol=1e-5), "f32 mismatch vs reference"

    # Unaligned-batch path (exercises conditional batch padding + output slice).
    x13 = jax.random.normal(k_x, (13, input_size), jnp.float32)
    out13 = jax.block_until_ready(autoencoder_forward(x13, params))
    ref13 = (x13 @ w1 + b1) @ w2 + b2
    assert out13.shape == (13, output_size)
    assert jnp.allclose(out13, ref13, atol=1e-5, rtol=1e-5), "padded-batch mismatch"

    # Optional bf16 compute path (halves HBM bytes; accumulation stays f32).
    params_bf16 = prepare_params(w1, b1, w2, b2, compute_dtype=jnp.bfloat16)
    out_bf16 = jax.block_until_ready(autoencoder_forward(x, params_bf16))
    assert out_bf16.shape == (batch, output_size)
    assert jnp.allclose(out_bf16, ref, atol=1e-1, rtol=1e-1), "bf16 path mismatch"

    print("KERNEL_OK")
</pallas_src>

<mosaic_0001>
module attributes {stable_mosaic.version = 11 : i64} {
  func.func @autoencoder_kernel(%arg0: i32, %arg1: memref<8x32xf32, #tpu.memory_space<vmem>>, %arg2: memref<32x128xf32, #tpu.memory_space<vmem>>, %arg3: memref<128x128xf32, #tpu.memory_space<vmem>>, %arg4: memref<1x128xf32, #tpu.memory_space<vmem>>, %arg5: memref<8x128xf32, #tpu.memory_space<vmem>>) attributes {dimension_semantics = [#tpu.dimension_semantics<parallel>], iteration_bounds = array<i64: 1>, scalar_prefetch = 0 : i64, scratch_operands = 0 : i64, tpu.core_type = #tpu.core_type<tc>, window_params = [{transform_indices = @transform_0, window_bounds = array<i64: 8, 32>}, {pipeline_mode = #tpu.pipeline_mode<synchronous>, transform_indices = @transform_1, window_bounds = array<i64: 32, 128>}, {pipeline_mode = #tpu.pipeline_mode<synchronous>, transform_indices = @transform_2, window_bounds = array<i64: 128, 128>}, {pipeline_mode = #tpu.pipeline_mode<synchronous>, transform_indices = @transform_3, window_bounds = array<i64: 1, 128>}, {transform_indices = @transform_4, window_bounds = array<i64: 8, 128>}]} {
    %c0 = arith.constant 0 : index
    %c0_0 = arith.constant 0 : index
    %0 = vector.load %arg1[%c0, %c0_0] : memref<8x32xf32, #tpu.memory_space<vmem>>, vector<8x32xf32>
    %c0_1 = arith.constant 0 : index
    %c0_2 = arith.constant 0 : index
    %1 = vector.load %arg2[%c0_1, %c0_2] : memref<32x128xf32, #tpu.memory_space<vmem>>, vector<32x128xf32>
    %cst = arith.constant dense<0.000000e+00> : vector<8x128xf32>
    %2 = tpu.matmul %0, %1, %cst {dimension_numbers = #tpu.dot_dimension_numbers<[1], [0], [0], [1], [0, 0, 1, 1], [], []>} : vector<8x32xf32>, vector<32x128xf32>, vector<8x128xf32> -> vector<8x128xf32>
    %c0_3 = arith.constant 0 : index
    %c0_4 = arith.constant 0 : index
    %3 = vector.load %arg3[%c0_3, %c0_4] : memref<128x128xf32, #tpu.memory_space<vmem>>, vector<128x128xf32>
    %cst_5 = arith.constant dense<0.000000e+00> : vector<8x128xf32>
    %4 = tpu.matmul %2, %3, %cst_5 {dimension_numbers = #tpu.dot_dimension_numbers<[1], [0], [0], [1], [0, 0, 1, 1], [], []>} : vector<8x128xf32>, vector<128x128xf32>, vector<8x128xf32> -> vector<8x128xf32>
    %c0_6 = arith.constant 0 : index
    %c0_7 = arith.constant 0 : index
    %5 = vector.load %arg4[%c0_6, %c0_7] : memref<1x128xf32, #tpu.memory_space<vmem>>, vector<1x128xf32>
    %6 = vector.broadcast %5 : vector<1x128xf32> to vector<8x128xf32>
    %7 = arith.addf %4, %6 : vector<8x128xf32>
    %c0_8 = arith.constant 0 : index
    %c0_9 = arith.constant 0 : index
    %8 = vector.load %arg5[%c0_8, %c0_9] : memref<8x128xf32, #tpu.memory_space<vmem>>, vector<8x128xf32>
    tpu.vector_store %arg5[%c0_8, %c0_9], %7 {strides = array<i32>} : memref<8x128xf32, #tpu.memory_space<vmem>>, vector<8x128xf32>,
    return
  }
  func.func @transform_0(%arg0: i32) -> (i32, i32) {
    %c0_i32 = arith.constant 0 : i32
    %c0_i32_0 = arith.constant 0 : i32
    return %arg0, %c0_i32 : i32, i32
  }
  func.func @transform_1(%arg0: i32) -> (i32, i32) {
    %c0_i32 = arith.constant 0 : i32
    %c0_i32_0 = arith.constant 0 : i32
    %c0_i32_1 = arith.constant 0 : i32
    return %c0_i32, %c0_i32_0 : i32, i32
  }
  func.func @transform_2(%arg0: i32) -> (i32, i32) {
    %c0_i32 = arith.constant 0 : i32
    %c0_i32_0 = arith.constant 0 : i32
    %c0_i32_1 = arith.constant 0 : i32
    return %c0_i32, %c0_i32_0 : i32, i32
  }
  func.func @transform_3(%arg0: i32) -> (i32, i32) {
    %c0_i32 = arith.constant 0 : i32
    %c0_i32_0 = arith.constant 0 : i32
    %c0_i32_1 = arith.constant 0 : i32
    return %c0_i32, %c0_i32_0 : i32, i32
  }
  func.func @transform_4(%arg0: i32) -> (i32, i32) {
    %c0_i32 = arith.constant 0 : i32
    %c0_i32_0 = arith.constant 0 : i32
    return %arg0, %c0_i32 : i32, i32
  }
}

module attributes {stable_mosaic.version = 11 : i64} {
  func.func @autoencoder_kernel(%arg0: i32, %arg1: memref<8x32xf32, #tpu.memory_space<vmem>>, %arg2: memref<32x128xf32, #tpu.memory_space<vmem>>, %arg3: memref<128x128xf32, #tpu.memory_space<vmem>>, %arg4: memref<1x128xf32, #tpu.memory_space<vmem>>, %arg5: memref<8x128xf32, #tpu.memory_space<vmem>>) attributes {dimension_semantics = [#tpu.dimension_semantics<parallel>], iteration_bounds = array<i64: 1>, scalar_prefetch = 0 : i64, scratch_operands = 0 : i64, tpu.core_type = #tpu.core_type<tc>, window_params = [{transform_indices = @transform_0, window_bounds = array<i64: 8, 32>}, {pipeline_mode = #tpu.pipeline_mode<synchronous>, transform_indices = @transform_1, window_bounds = array<i64: 32, 128>}, {pipeline_mode = #tpu.pipeline_mode<synchronous>, transform_indices = @transform_2, window_bounds = array<i64: 128, 128>}, {pipeline_mode = #tpu.pipeline_mode<synchronous>, transform_indices = @transform_3, window_bounds = array<i64: 1, 128>}, {transform_indices = @transform_4, window_bounds = array<i64: 8, 128>}]} {
    %c0 = arith.constant 0 : index
    %c0_0 = arith.constant 0 : index
    %0 = vector.load %arg1[%c0, %c0_0] : memref<8x32xf32, #tpu.memory_space<vmem>>, vector<8x32xf32>
    %c0_1 = arith.constant 0 : index
    %c0_2 = arith.constant 0 : index
    %1 = vector.load %arg2[%c0_1, %c0_2] : memref<32x128xf32, #tpu.memory_space<vmem>>, vector<32x128xf32>
    %cst = arith.constant dense<0.000000e+00> : vector<8x128xf32>
    %2 = tpu.matmul %0, %1, %cst {dimension_numbers = #tpu.dot_dimension_numbers<[1], [0], [0], [1], [0, 0, 1, 1], [], []>} : vector<8x32xf32>, vector<32x128xf32>, vector<8x128xf32> -> vector<8x128xf32>
    %c0_3 = arith.constant 0 : index
    %c0_4 = arith.constant 0 : index
    %3 = vector.load %arg3[%c0_3, %c0_4] : memref<128x128xf32, #tpu.memory_space<vmem>>, vector<128x128xf32>
    %cst_5 = arith.constant dense<0.000000e+00> : vector<8x128xf32>
    %4 = tpu.matmul %2, %3, %cst_5 {dimension_numbers = #tpu.dot_dimension_numbers<[1], [0], [0], [1], [0, 0, 1, 1], [], []>} : vector<8x128xf32>, vector<128x128xf32>, vector<8x128xf32> -> vector<8x128xf32>
    %c0_6 = arith.constant 0 : index
    %c0_7 = arith.constant 0 : index
    %5 = vector.load %arg4[%c0_6, %c0_7] : memref<1x128xf32, #tpu.memory_space<vmem>>, vector<1x128xf32>
    %6 = vector.broadcast %5 : vector<1x128xf32> to vector<8x128xf32>
    %7 = arith.addf %4, %6 : vector<8x128xf32>
    %c0_8 = arith.constant 0 : index
    %c0_9 = arith.constant 0 : index
    %8 = vector.load %arg5[%c0_8, %c0_9] : memref<8x128xf32, #tpu.memory_space<vmem>>, vector<8x128xf32>
    tpu.vector_store %arg5[%c0_8, %c0_9], %7 {strides = array<i32>} : memref<8x128xf32, #tpu.memory_space<vmem>>, vector<8x128xf32>,
    return
  }
  func.func @transform_0(%arg0: i32) -> (i32, i32) {
    %c0_i32 = arith.constant 0 : i32
    %c0_i32_0 = arith.constant 0 : i32
    return %arg0, %c0_i32 : i32, i32
  }
  func.func @transform_1(%arg0: i32) -> (i32, i32) {
    %c0_i32 = arith.constant 0 : i32
    %c0_i32_0 = arith.constant 0 : i32
    %c0_i32_1 = arith.constant 0 : i32
    return %c0_i32, %c0_i32_0 : i32, i32
  }
  func.func @transform_2(%arg0: i32) -> (i32, i32) {
    %c0_i32 = arith.constant 0 : i32
    %c0_i32_0 = arith.constant 0 : i32
    %c0_i32_1 = arith.constant 0 : i32
    return %c0_i32, %c0_i32_0 : i32, i32
  }
  func.func @transform_3(%arg0: i32) -> (i32, i32) {
    %c0_i32 = arith.constant 0 : i32
    %c0_i32_0 = arith.constant 0 : i32
    %c0_i32_1 = arith.constant 0 : i32
    return %c0_i32, %c0_i32_0 : i32, i32
  }
  func.func @transform_4(%arg0: i32) -> (i32, i32) {
    %c0_i32 = arith.constant 0 : i32
    %c0_i32_0 = arith.constant 0 : i32
    return %arg0, %c0_i32 : i32, i32
  }
}

</mosaic_0001>

<bundles_post_ra>
// kernel: tpu_custom_call.1
= control target key start
LH: loop header
LB: loop body
LE: loop exit
PB: predicated region body
PF: predicated region fallthrough
CT: control target
= control target key end

     0   :  { %9 = vsyncpa [#allocation3], 0  ;;  %s540_s0 = inlined_call_operand.hbm [shape: f32[8,32], index: 0, kind: input, shape index: {}]   ;;  %s541_s1 = inlined_call_operand.hbm [shape: f32[32,128], index: 1, kind: input, shape index: {}]   ;;  %s542_s2 = inlined_call_operand.hbm [shape: f32[128,128], index: 2, kind: input, shape index: {}]   ;;  %s543_s3 = inlined_call_operand.vmem [shape: f32[1,128], index: 3, kind: input, shape index: {}]   ;;  %s544_s4 = inlined_call_operand.hbm [shape: f32[8,128], index: 4, kind: output, shape index: {}]  }
   0x1   :  { %10 = vsyncpa [#allocation6], 0 }
   0x2   :  { %11 = vsyncpa [#allocation4], 0  ;;  %s449_s15 = smov [#allocation5]   ;;  %s355_s19 = scalar_lea.hbm %s541_s1, 512 }
   0x3   :  { %s27_s16 = sshll.u32 %s449_s15, 4  ;;  %p356_p0 = scmp.ne.s32.totalorder %s541_s1, %s355_s19  ;;  %s28_s16 = int_to_ptr.vmem [resolvable:$true] %s27_s16 }
   0x4   :  { %p359_p1 = scmp.lt.u32.totalorder %s355_s19, %s541_s1 }
   0x6   :  { %p361_p2 = pnand %p359_p1, %p356_p0 }
   0x8   :  { %364 = shalt.err (!%p361_p2)
}
   0x9   :  { %s365_s24 = scalar_lea.vmem %s28_s16, 512  ;;  %p370_p4 = scmp.lt.s32.totalorder %s28_s16, %s28_s16 }
   0xa   :  { %p366_p3 = scmp.ne.s32.totalorder %s28_s16, %s365_s24  ;;  %p371_p5 = scmp.lt.s32.totalorder %s365_s24, %s365_s24 }
   0xc   :  { %p372_p6 = por %p371_p5, %p370_p4 }
   0xe   :  { %p373_p7 = pnand %p372_p6, %p366_p3 }
  0x10   :  { %376 = shalt.err (!%p373_p7)
}
  0x11   :  { %s450_s25 = smov 128   ;;  %s451_s26 = smov 8  }
  0x12   :  { %33 = dma.hbm_to_vmem [thread:$0]  %s541_s1, 512, %s28_s16, [#allocation6], %s450_s25, %s450_s25, %s451_s26  }
  0x13   :  { %s452_s29 = smov [#allocation2]   ;;  %s453_s5 = smov [#allocation7]  }
  0x14   :  { %s18_s30 = sshll.u32 %s452_s29, 4  ;;  %s39_s6 = sshll.u32 %s453_s5, 4  ;;  %s19_s30 = int_to_ptr.vmem [resolvable:$true] %s18_s30  ;;  %s40_s6 = int_to_ptr.vmem [resolvable:$true] %s39_s6 }
  0x15   :  { %s377_s9 = scalar_lea.hbm %s540_s0, 128 }
  0x16   :  { %p378_p8 = scmp.ne.s32.totalorder %s540_s0, %s377_s9  ;;  %p381_p9 = scmp.lt.u32.totalorder %s377_s9, %s540_s0 }
  0x18   :  { %p383_p10 = pnand %p381_p9, %p378_p8 }
  0x1a   :  { %386 = shalt.err (!%p383_p10)
}
  0x1b   :  { %s387_s1 = scalar_lea.vmem %s19_s30, 128  ;;  %p392_p12 = scmp.lt.s32.totalorder %s19_s30, %s19_s30 }
  0x1c   :  { %p388_p11 = scmp.ne.s32.totalorder %s19_s30, %s387_s1  ;;  %p393_p13 = scmp.lt.s32.totalorder %s387_s1, %s387_s1 }
  0x1e   :  { %p394_p0 = por %p393_p13, %p392_p12 }
  0x20   :  { %p395_p1 = pnand %p394_p0, %p388_p11 }
  0x22   :  { %398 = shalt.err (!%p395_p1)
}
  0x23   :  { %21 = dma.hbm_to_vmem [thread:$0]  %s540_s0, 128, %s19_s30, [#allocation3]  }
  0x24   :  { %s399_s18 = scalar_lea.hbm %s542_s2, 2048 }
  0x25   :  { %p400_p2 = scmp.ne.s32.totalorder %s542_s2, %s399_s18  ;;  %p403_p3 = scmp.lt.u32.totalorder %s399_s18, %s542_s2 }
  0x27   :  { %p405_p4 = pnand %p403_p3, %p400_p2 }
  0x29   :  { %408 = shalt.err (!%p405_p4)
}
  0x2a   :  { %s409_s23 = scalar_lea.vmem %s40_s6, 2048  ;;  %p414_p6 = scmp.lt.s32.totalorder %s40_s6, %s40_s6 }
  0x2b   :  { %p410_p5 = scmp.ne.s32.totalorder %s40_s6, %s409_s23  ;;  %p415_p7 = scmp.lt.s32.totalorder %s409_s23, %s409_s23 }
  0x2d   :  { %p416_p8 = por %p415_p7, %p414_p6 }
  0x2f   :  { %p417_p9 = pnand %p416_p8, %p410_p5 }
  0x31   :  { %420 = shalt.err (!%p417_p9)
}
  0x32   :  { %45 = dma.hbm_to_vmem [thread:$0]  %s542_s2, 2048, %s40_s6, [#allocation6], %s450_s25, %s450_s25, %s451_s26  }
  0x33   :  { %443 = dma.done.wait [#allocation3], 128  }
  0x34   :  { %444 = vsyncadd [#allocation3], 4294967168 }
  0x35   :  { %445 = dma.done.wait [#allocation6], 2560  }
  0x36   :  { %446 = vsyncadd [#allocation6], 4294964736  ;;  %v454_v0 = vmov 0.0|0.0   ;;  %vm455_vm0 = vmmov 0   ;;  %v456_v1 = vmov 0.0   ;;  %v58_v2 = vld [vmem:[#allocation5] sm:$0xff] }
  0x37   :  { %316 = vmatprep.subr.bf16.mxu0 %v454_v0  ;;  %278 = vmatprep.mubr.msk.f32.mxu0 %vm455_vm0, %v456_v1  ;;  %v59_v3 = vld [vmem:[#allocation5 + $0x8] sm:$0xff]  ;;  %v60_v4 = vld [vmem:[#allocation5 + $0x10] sm:$0xff]  ;;  %v61_v6 = vld [vmem:[#allocation5 + $0x18] sm:$0xff]  ;;  %vm62_vm1 = vcmask 261120   ;;  %s457_s26 = smov [#allocation8]  }
  0x38   :  { %322 = vmatprep.subr.bf16.mxu1 %v454_v0  ;;  %313 = vmatprep.mubr.msk.f32.mxu1 %vm455_vm0, %v456_v1  ;;  %v317_v5 = vpack.c.bf16 %v59_v3, %v58_v2  ;;  %v136_v7 = vld [vmem:[#allocation7] sm:$0xff]  ;;  %v137_v8 = vld [vmem:[#allocation7 + $0x8] sm:$0xff]  ;;  %v138_v9 = vld [vmem:[#allocation7 + $0x10] sm:$0xff]  ;;  %v320_v11 = vpack.c.bf16 %v61_v6, %v60_v4  ;;  %s236_s27 = sshll.u32 %s457_s26, 4  ;;  %s237_s27 = int_to_ptr.vmem [resolvable:$true] %s236_s27 }
  0x39   :  { %v139_v10 = vld [vmem:[#allocation7 + $0x18] sm:$0xff]  ;;  %v323_v12 = vpack.c.bf16 %v137_v8, %v136_v7  ;;  %v140_v14 = vld [vmem:[#allocation7 + $0x20] sm:$0xff]  ;;  %v141_v15 = vld [vmem:[#allocation7 + $0x28] sm:$0xff]  ;;  %s421_s28 = scalar_lea.vmem %s237_s27, 128  ;;  %p426_p11 = scmp.lt.s32.totalorder %s237_s27, %s237_s27 }
  0x3a   :  { %318 = vmatpush3.bf16.msra.mxu0 %v317_v5  ;;  %v326_v13 = vpack.c.bf16 %v139_v10, %v138_v9  ;;  %v57_v16 = vld [vmem:[#allocation2] sm:$0xff]  ;;  %v329_v17 = vpack.c.bf16 %v141_v15, %v140_v14  ;;  %v142_v18 = vld [vmem:[#allocation7 + $0x30] sm:$0xff]  ;;  %v144_v21 = vld [vmem:[#allocation7 + $0x40] sm:$0xff]  ;;  %p422_p10 = scmp.ne.s32.totalorder %s237_s27, %s421_s28  ;;  %p427_p12 = scmp.lt.s32.totalorder %s421_s28, %s421_s28 }
  0x3b   :  { %319 = vmatprep.subr.bf16.mxu0 %v454_v0  ;;  %324 = vmatpush3.bf16.msra.mxu1 %v323_v12  ;;  %v143_v19 = vld [vmem:[#allocation7 + $0x38] sm:$0xff]  ;;  %v145_v22 = vld [vmem:[#allocation7 + $0x48] sm:$0xff]  ;;  %v146_v24 = vld [vmem:[#allocation7 + $0x50] sm:$0xff] }
  0x3c   :  { %325 = vmatprep.subr.bf16.mxu1 %v454_v0  ;;  %v332_v20 = vpack.c.bf16 %v143_v19, %v142_v18  ;;  %v335_v23 = vpack.c.bf16 %v145_v22, %v144_v21  ;;  %v147_v25 = vld [vmem:[#allocation7 + $0x58] sm:$0xff]  ;;  %v148_v27 = vld [vmem:[#allocation7 + $0x60] sm:$0xff]  ;;  %v149_v28 = vld [vmem:[#allocation7 + $0x68] sm:$0xff]  ;;  %p428_p13 = por %p427_p12, %p426_p11 }
  0x3d   :  { %v338_v26 = vpack.c.bf16 %v147_v25, %v146_v24  ;;  %v341_v29 = vpack.c.bf16 %v149_v28, %v148_v27  ;;  %v150_v30 = vld [vmem:[#allocation7 + $0x70] sm:$0xff]  ;;  %v151_v31 = vld [vmem:[#allocation7 + $0x78] sm:$0xff] }
  0x3e   :  { %321 = vmatpush3.bf16.msra.mxu0 %v320_v11  ;;  %v344_v32 = vpack.c.bf16 %v151_v31, %v150_v30  ;;  %v247_v35 = vld [vmem:[%s543_s3] ss:$0 sm:$0xff]  ;;  %p429_p0 = pnand %p428_p13, %p422_p10 }
  0x3f   :  { %327 = vmatpush3.bf16.msra.mxu1 %v326_v13 }
  0x40   :  { %328 = vmatprep.subr.bf16.mxu1 %v454_v0 }
  0x41   :  { %279 = vmatmul.mubr.msk.f32.vlgmr.msra.gmra.mrb[0].mxu0 %vm62_vm1, %v57_v16 }
  0x43   :  { %330 = vmatpush3.bf16.msra.mxu1 %v329_v17 }
  0x44   :  { %331 = vmatprep.subr.bf16.mxu1 %v454_v0 }
  0x47   :  { %333 = vmatpush3.bf16.msra.mxu1 %v332_v20 }
  0x48   :  { %334 = vmatprep.subr.bf16.mxu1 %v454_v0 }
  0x4b   :  { %336 = vmatpush3.bf16.msra.mxu1 %v335_v23 }
  0x4c   :  { %337 = vmatprep.subr.bf16.mxu1 %v454_v0 }
  0x4f   :  { %339 = vmatpush3.bf16.msra.mxu1 %v338_v26 }
  0x50   :  { %340 = vmatprep.subr.bf16.mxu1 %v454_v0 }
  0x53   :  { %342 = vmatpush3.bf16.msra.mxu1 %v341_v29 }
  0x54   :  { %343 = vmatprep.subr.bf16.mxu1 %v454_v0 }
  0x57   :  { %345 = vmatpush3.bf16.msra.mxu1 %v344_v32 }
 0x114   :  { %v132_v33 = vpop.f32.mrb[0].mxu0 }
 0x115   :  { %v280_v34 = vpop.f32.mrb[1].mxu0  ;;  %314 = vmatmul.mubr.f32.vlgmr.msra.gmra.mrb[0].mxu1 %v132_v33 }
 0x1e8   :  { %v225_v36 = vpop.f32.mrb[0].mxu1 }
 0x1e9   :  { %v226_v37 = vadd.f32 %v247_v35, %v225_v36  ;;  %v315_v38 = vpop.f32.mrb[1].mxu1 }
 0x1eb   :  { %229 = vst [vmem:[#allocation8] sm:$0xff] %v226_v37 }
 0x1ec   :  { %432 = shalt.err (!%p429_p0)
}
 0x1ed   :  { %s433_s5 = scalar_lea.hbm %s544_s4, 128 }
 0x1ee   :  { %p434_p1 = scmp.ne.s32.totalorder %s544_s4, %s433_s5  ;;  %p437_p2 = scmp.lt.u32.totalorder %s433_s5, %s544_s4 }
 0x1f0   :  { %p439_p3 = pnand %p437_p2, %p434_p1 }
 0x1f2   :  { %442 = shalt.err (!%p439_p3)
}
 0x1f3   :  { %239 = dma.vmem_to_hbm [thread:$0]  %s237_s27, 128, %s544_s4, [#allocation4]  }
 0x1f4   :  { %447 = dma.done.wait [#allocation4], 128  }
 0x1f5   :  { %448 = vsyncadd [#allocation4], 4294967168 }
 0x1f6   :  { %243 = vsyncpa [#allocation3], 1 }
 0x1f7   :  { %244 = vsyncpa [#allocation6], 1 }
 0x1f8   :  { %245 = vsyncpa [#allocation4], 1 }

// kernel: tpu_custom_call.1
= control target key start
LH: loop header
LB: loop body
LE: loop exit
PB: predicated region body
PF: predicated region fallthrough
CT: control target
= control target key end

     0   :  { %9 = vsyncpa [#allocation3], 0  ;;  %s540_s0 = inlined_call_operand.hbm [shape: f32[8,32], index: 0, kind: input, shape index: {}]   ;;  %s541_s1 = inlined_call_operand.hbm [shape: f32[32,128], index: 1, kind: input, shape index: {}]   ;;  %s542_s2 = inlined_call_operand.hbm [shape: f32[128,128], index: 2, kind: input, shape index: {}]   ;;  %s543_s3 = inlined_call_operand.vmem [shape: f32[1,128], index: 3, kind: input, shape index: {}]   ;;  %s544_s4 = inlined_call_operand.hbm [shape: f32[8,128], index: 4, kind: output, shape index: {}]  }
   0x1   :  { %10 = vsyncpa [#allocation6], 0 }
   0x2   :  { %11 = vsyncpa [#allocation4], 0  ;;  %s449_s15 = smov [#allocation5]   ;;  %s355_s19 = scalar_lea.hbm %s541_s1, 512 }
   0x3   :  { %s27_s16 = sshll.u32 %s449_s15, 4  ;;  %p356_p0 = scmp.ne.s32.totalorder %s541_s1, %s355_s19  ;;  %s28_s16 = int_to_ptr.vmem [resolvable:$true] %s27_s16 }
   0x4   :  { %p359_p1 = scmp.lt.u32.totalorder %s355_s19, %s541_s1 }
   0x6   :  { %p361_p2 = pnand %p359_p1, %p356_p0 }
   0x8   :  { %364 = shalt.err (!%p361_p2)
}
   0x9   :  { %s365_s24 = scalar_lea.vmem %s28_s16, 512  ;;  %p370_p4 = scmp.lt.s32.totalorder %s28_s16, %s28_s16 }
   0xa   :  { %p366_p3 = scmp.ne.s32.totalorder %s28_s16, %s365_s24  ;;  %p371_p5 = scmp.lt.s32.totalorder %s365_s24, %s365_s24 }
   0xc   :  { %p372_p6 = por %p371_p5, %p370_p4 }
   0xe   :  { %p373_p7 = pnand %p372_p6, %p366_p3 }
  0x10   :  { %376 = shalt.err (!%p373_p7)
}
  0x11   :  { %s450_s25 = smov 128   ;;  %s451_s26 = smov 8  }
  0x12   :  { %33 = dma.hbm_to_vmem [thread:$0]  %s541_s1, 512, %s28_s16, [#allocation6], %s450_s25, %s450_s25, %s451_s26  }
  0x13   :  { %s452_s29 = smov [#allocation2]   ;;  %s453_s5 = smov [#allocation7]  }
  0x14   :  { %s18_s30 = sshll.u32 %s452_s29, 4  ;;  %s39_s6 = sshll.u32 %s453_s5, 4  ;;  %s19_s30 = int_to_ptr.vmem [resolvable:$true] %s18_s30  ;;  %s40_s6 = int_to_ptr.vmem [resolvable:$true] %s39_s6 }
  0x15   :  { %s377_s9 = scalar_lea.hbm %s540_s0, 128 }
  0x16   :  { %p378_p8 = scmp.ne.s32.totalorder %s540_s0, %s377_s9  ;;  %p381_p9 = scmp.lt.u32.totalorder %s377_s9, %s540_s0 }
  0x18   :  { %p383_p10 = pnand %p381_p9, %p378_p8 }
  0x1a   :  { %386 = shalt.err (!%p383_p10)
}
  0x1b   :  { %s387_s1 = scalar_lea.vmem %s19_s30, 128  ;;  %p392_p12 = scmp.lt.s32.totalorder %s19_s30, %s19_s30 }
  0x1c   :  { %p388_p11 = scmp.ne.s32.totalorder %s19_s30, %s387_s1  ;;  %p393_p13 = scmp.lt.s32.totalorder %s387_s1, %s387_s1 }
  0x1e   :  { %p394_p0 = por %p393_p13, %p392_p12 }
  0x20   :  { %p395_p1 = pnand %p394_p0, %p388_p11 }
  0x22   :  { %398 = shalt.err (!%p395_p1)
}
  0x23   :  { %21 = dma.hbm_to_vmem [thread:$0]  %s540_s0, 128, %s19_s30, [#allocation3]  }
  0x24   :  { %s399_s18 = scalar_lea.hbm %s542_s2, 2048 }
  0x25   :  { %p400_p2 = scmp.ne.s32.totalorder %s542_s2, %s399_s18  ;;  %p403_p3 = scmp.lt.u32.totalorder %s399_s18, %s542_s2 }
  0x27   :  { %p405_p4 = pnand %p403_p3, %p400_p2 }
  0x29   :  { %408 = shalt.err (!%p405_p4)
}
  0x2a   :  { %s409_s23 = scalar_lea.vmem %s40_s6, 2048  ;;  %p414_p6 = scmp.lt.s32.totalorder %s40_s6, %s40_s6 }
  0x2b   :  { %p410_p5 = scmp.ne.s32.totalorder %s40_s6, %s409_s23  ;;  %p415_p7 = scmp.lt.s32.totalorder %s409_s23, %s409_s23 }
  0x2d   :  { %p416_p8 = por %p415_p7, %p414_p6 }
  0x2f   :  { %p417_p9 = pnand %p416_p8, %p410_p5 }
  0x31   :  { %420 = shalt.err (!%p417_p9)
}
  0x32   :  { %45 = dma.hbm_to_vmem [thread:$0]  %s542_s2, 2048, %s40_s6, [#allocation6], %s450_s25, %s450_s25, %s451_s26  }
  0x33   :  { %443 = dma.done.wait [#allocation3], 128  }
  0x34   :  { %444 = vsyncadd [#allocation3], 4294967168 }
  0x35   :  { %445 = dma.done.wait [#allocation6], 2560  }
  0x36   :  { %446 = vsyncadd [#allocation6], 4294964736  ;;  %v454_v0 = vmov 0.0|0.0   ;;  %vm455_vm0 = vmmov 0   ;;  %v456_v1 = vmov 0.0   ;;  %v58_v2 = vld [vmem:[#allocation5] sm:$0xff] }
  0x37   :  { %316 = vmatprep.subr.bf16.mxu0 %v454_v0  ;;  %278 = vmatprep.mubr.msk.f32.mxu0 %vm455_vm0, %v456_v1  ;;  %v59_v3 = vld [vmem:[#allocation5 + $0x8] sm:$0xff]  ;;  %v60_v4 = vld [vmem:[#allocation5 + $0x10] sm:$0xff]  ;;  %v61_v6 = vld [vmem:[#allocation5 + $0x18] sm:$0xff]  ;;  %vm62_vm1 = vcmask 261120   ;;  %s457_s26 = smov [#allocation8]  }
  0x38   :  { %322 = vmatprep.subr.bf16.mxu1 %v454_v0  ;;  %313 = vmatprep.mubr.msk.f32.mxu1 %vm455_vm0, %v456_v1  ;;  %v317_v5 = vpack.c.bf16 %v59_v3, %v58_v2  ;;  %v136_v7 = vld [vmem:[#allocation7] sm:$0xff]  ;;  %v137_v8 = vld [vmem:[#allocation7 + $0x8] sm:$0xff]  ;;  %v138_v9 = vld [vmem:[#allocation7 + $0x10] sm:$0xff]  ;;  %v320_v11 = vpack.c.bf16 %v61_v6, %v60_v4  ;;  %s236_s27 = sshll.u32 %s457_s26, 4  ;;  %s237_s27 = int_to_ptr.vmem [resolvable:$true] %s236_s27 }
  0x39   :  { %v139_v10 = vld [vmem:[#allocation7 + $0x18] sm:$0xff]  ;;  %v323_v12 = vpack.c.bf16 %v137_v8, %v136_v7  ;;  %v140_v14 = vld [vmem:[#allocation7 + $0x20] sm:$0xff]  ;;  %v141_v15 = vld [vmem:[#allocation7 + $0x28] sm:$0xff]  ;;  %s421_s28 = scalar_lea.vmem %s237_s27, 128  ;;  %p426_p11 = scmp.lt.s32.totalorder %s237_s27, %s237_s27 }
  0x3a   :  { %318 = vmatpush3.bf16.msra.mxu0 %v317_v5  ;;  %v326_v13 = vpack.c.bf16 %v139_v10, %v138_v9  ;;  %v57_v16 = vld [vmem:[#allocation2] sm:$0xff]  ;;  %v329_v17 = vpack.c.bf16 %v141_v15, %v140_v14  ;;  %v142_v18 = vld [vmem:[#allocation7 + $0x30] sm:$0xff]  ;;  %v144_v21 = vld [vmem:[#allocation7 + $0x40] sm:$0xff]  ;;  %p422_p10 = scmp.ne.s32.totalorder %s237_s27, %s421_s28  ;;  %p427_p12 = scmp.lt.s32.totalorder %s421_s28, %s421_s28 }
  0x3b   :  { %319 = vmatprep.subr.bf16.mxu0 %v454_v0  ;;  %324 = vmatpush3.bf16.msra.mxu1 %v323_v12  ;;  %v143_v19 = vld [vmem:[#allocation7 + $0x38] sm:$0xff]  ;;  %v145_v22 = vld [vmem:[#allocation7 + $0x48] sm:$0xff]  ;;  %v146_v24 = vld [vmem:[#allocation7 + $0x50] sm:$0xff] }
  0x3c   :  { %325 = vmatprep.subr.bf16.mxu1 %v454_v0  ;;  %v332_v20 = vpack.c.bf16 %v143_v19, %v142_v18  ;;  %v335_v23 = vpack.c.bf16 %v145_v22, %v144_v21  ;;  %v147_v25 = vld [vmem:[#allocation7 + $0x58] sm:$0xff]  ;;  %v148_v27 = vld [vmem:[#allocation7 + $0x60] sm:$0xff]  ;;  %v149_v28 = vld [vmem:[#allocation7 + $0x68] sm:$0xff]  ;;  %p428_p13 = por %p427_p12, %p426_p11 }
  0x3d   :  { %v338_v26 = vpack.c.bf16 %v147_v25, %v146_v24  ;;  %v341_v29 = vpack.c.bf16 %v149_v28, %v148_v27  ;;  %v150_v30 = vld [vmem:[#allocation7 + $0x70] sm:$0xff]  ;;  %v151_v31 = vld [vmem:[#allocation7 + $0x78] sm:$0xff] }
  0x3e   :  { %321 = vmatpush3.bf16.msra.mxu0 %v320_v11  ;;  %v344_v32 = vpack.c.bf16 %v151_v31, %v150_v30  ;;  %v247_v35 = vld [vmem:[%s543_s3] ss:$0 sm:$0xff]  ;;  %p429_p0 = pnand %p428_p13, %p422_p10 }
  0x3f   :  { %327 = vmatpush3.bf16.msra.mxu1 %v326_v13 }
  0x40   :  { %328 = vmatprep.subr.bf16.mxu1 %v454_v0 }
  0x41   :  { %279 = vmatmul.mubr.msk.f32.vlgmr.msra.gmra.mrb[0].mxu0 %vm62_vm1, %v57_v16 }
  0x43   :  { %330 = vmatpush3.bf16.msra.mxu1 %v329_v17 }
  0x44   :  { %331 = vmatprep.subr.bf16.mxu1 %v454_v0 }
  0x47   :  { %333 = vmatpush3.bf16.msra.mxu1 %v332_v20 }
  0x48   :  { %334 = vmatprep.subr.bf16.mxu1 %v454_v0 }
  0x4b   :  { %336 = vmatpush3.bf16.msra.mxu1 %v335_v23 }
  0x4c   :  { %337 = vmatprep.subr.bf16.mxu1 %v454_v0 }
  0x4f   :  { %339 = vmatpush3.bf16.msra.mxu1 %v338_v26 }
  0x50   :  { %340 = vmatprep.subr.bf16.mxu1 %v454_v0 }
  0x53   :  { %342 = vmatpush3.bf16.msra.mxu1 %v341_v29 }
  0x54   :  { %343 = vmatprep.subr.bf16.mxu1 %v454_v0 }
  0x57   :  { %345 = vmatpush3.bf16.msra.mxu1 %v344_v32 }
 0x114   :  { %v132_v33 = vpop.f32.mrb[0].mxu0 }
 0x115   :  { %v280_v34 = vpop.f32.mrb[1].mxu0  ;;  %314 = vmatmul.mubr.f32.vlgmr.msra.gmra.mrb[0].mxu1 %v132_v33 }
 0x1e8   :  { %v225_v36 = vpop.f32.mrb[0].mxu1 }
 0x1e9   :  { %v226_v37 = vadd.f32 %v247_v35, %v225_v36  ;;  %v315_v38 = vpop.f32.mrb[1].mxu1 }
 0x1eb   :  { %229 = vst [vmem:[#allocation8] sm:$0xff] %v226_v37 }
 0x1ec   :  { %432 = shalt.err (!%p429_p0)
}
 0x1ed   :  { %s433_s5 = scalar_lea.hbm %s544_s4, 128 }
 0x1ee   :  { %p434_p1 = scmp.ne.s32.totalorder %s544_s4, %s433_s5  ;;  %p437_p2 = scmp.lt.u32.totalorder %s433_s5, %s544_s4 }
 0x1f0   :  { %p439_p3 = pnand %p437_p2, %p434_p1 }
 0x1f2   :  { %442 = shalt.err (!%p439_p3)
}
 0x1f3   :  { %239 = dma.vmem_to_hbm [thread:$0]  %s237_s27, 128, %s544_s4, [#allocation4]  }
 0x1f4   :  { %447 = dma.done.wait [#allocation4], 128  }
 0x1f5   :  { %448 = vsyncadd [#allocation4], 4294967168 }
 0x1f6   :  { %243 = vsyncpa [#allocation3], 1 }
 0x1f7   :  { %244 = vsyncpa [#allocation6], 1 }
 0x1f8   :  { %245 = vsyncpa [#allocation4], 1 }

</bundles_post_ra>
